<compile_context>
chip_gen: v6e
topology: v6e:2x2x1
jax: 0.10.0
libtpu: 0.0.40
codegen_flags: <defaults>
</compile_context>

<pallas_src>
import jax
import jax.numpy as jnp
from jax.experimental import pallas as pl
from jax.experimental.pallas import tpu as pltpu

LEAKY_SLOPE = 0.01   # nn.LeakyReLU() default
BN_EPS = 1e-5


# ----------------------------------------------------------------------------
# Kernel
# ----------------------------------------------------------------------------
def _mlp_kernel(xi_ref, xj_ref,
                w1_ref, t1_ref, w2_ref, t2_ref,
                w3_ref, t3_ref, w4_ref, t4_ref,
                wl_ref, o_ref):
    ti = xi_ref.shape[1]          # query-token tile
    n = xj_ref.shape[1]           # full token count (j axis)
    d = xi_ref.shape[2]
    cdt = w1_ref.dtype            # compute dtype for the MXU (f32 or bf16)

    xi = xi_ref[0].astype(cdt)    # (TI, D)
    xj = xj_ref[0].astype(cdt)    # (N, D)

    # Pairwise features |x_i - x_j| flattened to rows of the MXU matmuls.
    feat = jnp.abs(xi[:, None, :] - xj[None, :, :]).reshape(ti * n, d)

    def layer(h, w_ref, t_ref):
        # 1x1 conv == matmul over channels.  BN scale is pre-folded into W,
        # only the per-channel shift remains; LeakyReLU(0.01) afterwards.
        y = jnp.dot(h, w_ref[...], preferred_element_type=jnp.float32)
        y = y + t_ref[...]
        y = jnp.where(y > 0, y, LEAKY_SLOPE * y)
        return y.astype(cdt)

    h = layer(feat, w1_ref, t1_ref)
    h = layer(h, w2_ref, t2_ref)
    h = layer(h, w3_ref, t3_ref)
    h = layer(h, w4_ref, t4_ref)

    # conv_last: channels -> 1.  Scalar bias dropped (softmax shift-invariant).
    a = jnp.dot(h, wl_ref[...], preferred_element_type=jnp.float32)  # (TI*N, 1)
    a = a.reshape(ti, n)                                             # i rows, j lanes

    # Row softmax over j, in f32.
    a = a - jnp.max(a, axis=-1, keepdims=True)
    e = jnp.exp(a)
    o_ref[0] = e * pl.reciprocal(jnp.sum(e, axis=-1, keepdims=True), approx=False)


# ----------------------------------------------------------------------------
# Host-side parameter folding / tiling helpers
# ----------------------------------------------------------------------------
def fold_params(params, compute_dtype=jnp.float32):
    """Fold eval-mode BatchNorm into the conv weights.

    W' = W * scale (scale = gamma / sqrt(var + eps)), shift = beta - mean*scale.
    The final conv bias is dropped (row-softmax is shift-invariant).
    """
    ws, ts = [], []
    for (w, gamma, beta, mean, var) in params[:4]:
        scale = gamma / jnp.sqrt(var + BN_EPS)
        ws.append((w * scale[None, :]).astype(compute_dtype))
        ts.append((beta - mean * scale)[None, :].astype(jnp.float32))
    wl, _bl = params[4]          # bias intentionally dropped
    return ws, ts, wl.astype(compute_dtype)


def _derive_tile_i(n, d, channels, compute_dtype, budget_bytes):
    """Largest i-tile whose (TI*N, C) intermediates fit the VMEM budget."""
    cbytes = jnp.dtype(compute_dtype).itemsize
    per_pair_row = cbytes * (d + sum(channels)) + 4 * (max(channels) + 1)
    rows = max(8 * n, budget_bytes // per_pair_row)
    ti = min(n, max(8, (rows // n) // 8 * 8))
    if n % ti != 0:
        while ti > 8 and n % ti != 0:
            ti -= 8
        if n % ti != 0:
            ti = n                 # full extent always legal
    return ti


# ----------------------------------------------------------------------------
# Wrapper
# ----------------------------------------------------------------------------
def mlp_pallas(X, params, *, compute_dtype=jnp.float32, tile_i=None,
               vmem_budget_bytes=24 << 20):
    """X: (B, N, D) float32 -> (B, N, N) row-softmaxed affinity."""
    B, N, D = X.shape
    ws, ts, wl = fold_params(params, compute_dtype)
    channels = [int(w.shape[1]) for w in ws]

    if tile_i is None:
        tile_i = _derive_tile_i(N, D, channels, compute_dtype, vmem_budget_bytes)
    assert N % tile_i == 0, (N, tile_i)

    # Explicit scoped-VMEM limit (defaults are well below physical).
    cbytes = jnp.dtype(compute_dtype).itemsize
    interm = tile_i * N * (cbytes * (D + sum(channels)) + 4 * (max(channels) + 1))
    io = 2 * 4 * (tile_i * D + N * D + tile_i * N)
    wbytes = 2 * sum(int(a.size) * a.dtype.itemsize for a in (*ws, *ts, wl))
    vmem_limit = int(min(64 << 20, max(32 << 20, 2 * (interm + io + wbytes))))

    def rep2d(arr):
        return pl.BlockSpec(arr.shape, lambda b, it: (0, 0))

    in_specs = [
        pl.BlockSpec((1, tile_i, D), lambda b, it: (b, it, 0)),   # x_i tile
        pl.BlockSpec((1, N, D), lambda b, it: (b, 0, 0)),         # full x_j row
    ]
    operands = [X, X]
    for w, t in zip(ws, ts):
        in_specs += [rep2d(w), rep2d(t)]
        operands += [w, t]
    in_specs.append(rep2d(wl))
    operands.append(wl)

    return pl.pallas_call(
        _mlp_kernel,
        out_shape=jax.ShapeDtypeStruct((B, N, N), jnp.float32),
        grid_spec=pltpu.PrefetchScalarGridSpec(
            num_scalar_prefetch=0,
            grid=(B, N // tile_i),
            in_specs=in_specs,
            out_specs=pl.BlockSpec((1, tile_i, N), lambda b, it: (b, it, 0)),
        ),
        compiler_params=pltpu.CompilerParams(
            dimension_semantics=("parallel", "parallel"),
            vmem_limit_bytes=vmem_limit),
    )(*operands)


# ----------------------------------------------------------------------------
# Synthetic parameters (shapes of the PyTorch module) + pure-JAX reference
# ----------------------------------------------------------------------------
def make_params(key, in_dim, hidden=16, ratio=(2, 2, 1, 1)):
    """[(W, gamma, beta, running_mean, running_var)] * 4 + [(W_last, b_last)]."""
    dims = [in_dim] + [hidden * r for r in ratio]
    keys = jax.random.split(key, 22)
    k = 0
    layers = []
    for li in range(4):
        cin, cout = dims[li], dims[li + 1]
        w = jax.random.normal(keys[k], (cin, cout), jnp.float32) / cin ** 0.5; k += 1
        gamma = 1.0 + 0.1 * jax.random.normal(keys[k], (cout,), jnp.float32); k += 1
        beta = 0.1 * jax.random.normal(keys[k], (cout,), jnp.float32); k += 1
        mean = 0.05 * jax.random.normal(keys[k], (cout,), jnp.float32); k += 1
        var = 1.0 + 0.1 * jax.random.uniform(keys[k], (cout,), jnp.float32); k += 1
        layers.append((w, gamma, beta, mean, var))
    c4 = dims[4]
    wl = jax.random.normal(keys[k], (c4, 1), jnp.float32) / c4 ** 0.5; k += 1
    bl = 0.1 * jax.random.normal(keys[k], (), jnp.float32)
    layers.append((wl, bl))
    return layers


def mlp_reference(X, params):
    """Direct JAX transcription of the PyTorch forward (eval-mode BN)."""
    h = jnp.abs(X[:, :, None, :] - X[:, None, :, :])     # (B, N, N, D)
    for (w, gamma, beta, mean, var) in params[:4]:
        h = jnp.einsum("bijc,cd->bijd", h, w)
        h = (h - mean) / jnp.sqrt(var + BN_EPS) * gamma + beta
        h = jnp.where(h > 0, h, LEAKY_SLOPE * h)
    wl, bl = params[4]
    a = jnp.einsum("bijc,cd->bijd", h, wl)[..., 0] + bl
    return jax.nn.softmax(a, axis=-1)


if __name__ == "__main__":
    key = jax.random.PRNGKey(0)
    kx, kp = jax.random.split(key)

    B, N, D = 2, 8, 4          # batch, tokens, feature dim of X
    hidden = 16                # channels: 32, 32, 16, 16 -> 1
    X = jax.random.normal(kx, (B, N, D), jnp.float32)
    params = make_params(kp, in_dim=D, hidden=hidden)

    ref = mlp_reference(X, params)

    # f32 path (bit-faithful to the module, tight tolerance).
    out = jax.block_until_ready(mlp_pallas(X, params))
    assert out.shape == (B, N, N), out.shape
    err = float(jnp.max(jnp.abs(out - ref)))
    assert err < 1e-4, err

    # bf16 MXU path (f32 accumulation + f32 softmax), looser tolerance.
    out_bf16 = jax.block_until_ready(
        mlp_pallas(X, params, compute_dtype=jnp.bfloat16))
    err_bf16 = float(jnp.max(jnp.abs(out_bf16 - ref)))
    assert err_bf16 < 5e-2, err_bf16

    print("KERNEL_OK")
</pallas_src>

<mosaic_0001>
module attributes {stable_mosaic.version = 11 : i64} {
  func.func @_mlp_kernel(%arg0: i32, %arg1: i32, %arg2: memref<1x8x4xf32, #tpu.memory_space<vmem>>, %arg3: memref<1x8x4xf32, #tpu.memory_space<vmem>>, %arg4: memref<4x32xf32, #tpu.memory_space<vmem>>, %arg5: memref<1x32xf32, #tpu.memory_space<vmem>>, %arg6: memref<32x32xf32, #tpu.memory_space<vmem>>, %arg7: memref<1x32xf32, #tpu.memory_space<vmem>>, %arg8: memref<32x16xf32, #tpu.memory_space<vmem>>, %arg9: memref<1x16xf32, #tpu.memory_space<vmem>>, %arg10: memref<16x16xf32, #tpu.memory_space<vmem>>, %arg11: memref<1x16xf32, #tpu.memory_space<vmem>>, %arg12: memref<16x1xf32, #tpu.memory_space<vmem>>, %arg13: memref<1x8x8xf32, #tpu.memory_space<vmem>>) attributes {dimension_semantics = [#tpu.dimension_semantics<parallel>, #tpu.dimension_semantics<parallel>], iteration_bounds = array<i64: 2, 1>, scalar_prefetch = 0 : i64, scratch_operands = 0 : i64, tpu.core_type = #tpu.core_type<tc>, window_params = [{transform_indices = @transform_0, window_bounds = array<i64: 1, 8, 4>}, {transform_indices = @transform_1, window_bounds = array<i64: 1, 8, 4>}, {pipeline_mode = #tpu.pipeline_mode<synchronous>, transform_indices = @transform_2, window_bounds = array<i64: 4, 32>}, {pipeline_mode = #tpu.pipeline_mode<synchronous>, transform_indices = @transform_3, window_bounds = array<i64: 1, 32>}, {pipeline_mode = #tpu.pipeline_mode<synchronous>, transform_indices = @transform_4, window_bounds = array<i64: 32, 32>}, {pipeline_mode = #tpu.pipeline_mode<synchronous>, transform_indices = @transform_5, window_bounds = array<i64: 1, 32>}, {pipeline_mode = #tpu.pipeline_mode<synchronous>, transform_indices = @transform_6, window_bounds = array<i64: 32, 16>}, {pipeline_mode = #tpu.pipeline_mode<synchronous>, transform_indices = @transform_7, window_bounds = array<i64: 1, 16>}, {pipeline_mode = #tpu.pipeline_mode<synchronous>, transform_indices = @transform_8, window_bounds = array<i64: 16, 16>}, {pipeline_mode = #tpu.pipeline_mode<synchronous>, transform_indices = @transform_9, window_bounds = array<i64: 1, 16>}, {pipeline_mode = #tpu.pipeline_mode<synchronous>, transform_indices = @transform_10, window_bounds = array<i64: 16, 1>}, {transform_indices = @transform_11, window_bounds = array<i64: 1, 8, 8>}]} {
    %c0 = arith.constant 0 : index
    %c0_0 = arith.constant 0 : index
    %c0_1 = arith.constant 0 : index
    %0 = vector.load %arg2[%c0, %c0_0, %c0_1] : memref<1x8x4xf32, #tpu.memory_space<vmem>>, vector<1x8x4xf32>
    %1 = vector.shape_cast %0 : vector<1x8x4xf32> to vector<8x4xf32>
    %c0_2 = arith.constant 0 : index
    %c0_3 = arith.constant 0 : index
    %c0_4 = arith.constant 0 : index
    %2 = vector.load %arg3[%c0_2, %c0_3, %c0_4] : memref<1x8x4xf32, #tpu.memory_space<vmem>>, vector<1x8x4xf32>
    %3 = vector.shape_cast %2 : vector<1x8x4xf32> to vector<8x4xf32>
    %4 = vector.shape_cast %1 : vector<8x4xf32> to vector<8x1x4xf32>
    %5 = vector.shape_cast %3 : vector<8x4xf32> to vector<1x8x4xf32>
    %6 = vector.broadcast %4 : vector<8x1x4xf32> to vector<8x8x4xf32>
    %7 = vector.broadcast %5 : vector<1x8x4xf32> to vector<8x8x4xf32>
    %8 = arith.subf %6, %7 : vector<8x8x4xf32>
    %9 = math.absf %8 : vector<8x8x4xf32>
    %10 = vector.shape_cast %9 : vector<8x8x4xf32> to vector<64x4xf32>
    %c0_5 = arith.constant 0 : index
    %c0_6 = arith.constant 0 : index
    %11 = vector.load %arg4[%c0_5, %c0_6] : memref<4x32xf32, #tpu.memory_space<vmem>>, vector<4x32xf32>
    %cst = arith.constant dense<0.000000e+00> : vector<64x32xf32>
    %12 = tpu.matmul %10, %11, %cst {dimension_numbers = #tpu.dot_dimension_numbers<[1], [0], [0], [1], [0, 0, 1, 1], [], []>} : vector<64x4xf32>, vector<4x32xf32>, vector<64x32xf32> -> vector<64x32xf32>
    %c0_7 = arith.constant 0 : index
    %c0_8 = arith.constant 0 : index
    %13 = vector.load %arg5[%c0_7, %c0_8] : memref<1x32xf32, #tpu.memory_space<vmem>>, vector<1x32xf32>
    %14 = vector.broadcast %13 : vector<1x32xf32> to vector<64x32xf32>
    %15 = arith.addf %12, %14 : vector<64x32xf32>
    %cst_9 = arith.constant 0.000000e+00 : f32
    %16 = vector.broadcast %cst_9 : f32 to vector<64x32xf32>
    %17 = arith.cmpf ogt, %15, %16 : vector<64x32xf32>
    %cst_10 = arith.constant 0.00999999977 : f32
    %18 = vector.broadcast %cst_10 : f32 to vector<64x32xf32>
    %19 = arith.mulf %18, %15 : vector<64x32xf32>
    %20 = arith.select %17, %15, %19 : vector<64x32xi1>, vector<64x32xf32>
    %c0_11 = arith.constant 0 : index
    %c0_12 = arith.constant 0 : index
    %21 = vector.load %arg6[%c0_11, %c0_12] : memref<32x32xf32, #tpu.memory_space<vmem>>, vector<32x32xf32>
    %cst_13 = arith.constant dense<0.000000e+00> : vector<64x32xf32>
    %22 = tpu.matmul %20, %21, %cst_13 {dimension_numbers = #tpu.dot_dimension_numbers<[1], [0], [0], [1], [0, 0, 1, 1], [], []>} : vector<64x32xf32>, vector<32x32xf32>, vector<64x32xf32> -> vector<64x32xf32>
    %c0_14 = arith.constant 0 : index
    %c0_15 = arith.constant 0 : index
    %23 = vector.load %arg7[%c0_14, %c0_15] : memref<1x32xf32, #tpu.memory_space<vmem>>, vector<1x32xf32>
    %24 = vector.broadcast %23 : vector<1x32xf32> to vector<64x32xf32>
    %25 = arith.addf %22, %24 : vector<64x32xf32>
    %cst_16 = arith.constant 0.000000e+00 : f32
    %26 = vector.broadcast %cst_16 : f32 to vector<64x32xf32>
    %27 = arith.cmpf ogt, %25, %26 : vector<64x32xf32>
    %cst_17 = arith.constant 0.00999999977 : f32
    %28 = vector.broadcast %cst_17 : f32 to vector<64x32xf32>
    %29 = arith.mulf %28, %25 : vector<64x32xf32>
    %30 = arith.select %27, %25, %29 : vector<64x32xi1>, vector<64x32xf32>
    %c0_18 = arith.constant 0 : index
    %c0_19 = arith.constant 0 : index
    %31 = vector.load %arg8[%c0_18, %c0_19] : memref<32x16xf32, #tpu.memory_space<vmem>>, vector<32x16xf32>
    %cst_20 = arith.constant dense<0.000000e+00> : vector<64x16xf32>
    %32 = tpu.matmul %30, %31, %cst_20 {dimension_numbers = #tpu.dot_dimension_numbers<[1], [0], [0], [1], [0, 0, 1, 1], [], []>} : vector<64x32xf32>, vector<32x16xf32>, vector<64x16xf32> -> vector<64x16xf32>
    %c0_21 = arith.constant 0 : index
    %c0_22 = arith.constant 0 : index
    %33 = vector.load %arg9[%c0_21, %c0_22] : memref<1x16xf32, #tpu.memory_space<vmem>>, vector<1x16xf32>
    %34 = vector.broadcast %33 : vector<1x16xf32> to vector<64x16xf32>
    %35 = arith.addf %32, %34 : vector<64x16xf32>
    %cst_23 = arith.constant 0.000000e+00 : f32
    %36 = vector.broadcast %cst_23 : f32 to vector<64x16xf32>
    %37 = arith.cmpf ogt, %35, %36 : vector<64x16xf32>
    %cst_24 = arith.constant 0.00999999977 : f32
    %38 = vector.broadcast %cst_24 : f32 to vector<64x16xf32>
    %39 = arith.mulf %38, %35 : vector<64x16xf32>
    %40 = arith.select %37, %35, %39 : vector<64x16xi1>, vector<64x16xf32>
    %c0_25 = arith.constant 0 : index
    %c0_26 = arith.constant 0 : index
    %41 = vector.load %arg10[%c0_25, %c0_26] : memref<16x16xf32, #tpu.memory_space<vmem>>, vector<16x16xf32>
    %cst_27 = arith.constant dense<0.000000e+00> : vector<64x16xf32>
    %42 = tpu.matmul %40, %41, %cst_27 {dimension_numbers = #tpu.dot_dimension_numbers<[1], [0], [0], [1], [0, 0, 1, 1], [], []>} : vector<64x16xf32>, vector<16x16xf32>, vector<64x16xf32> -> vector<64x16xf32>
    %c0_28 = arith.constant 0 : index
    %c0_29 = arith.constant 0 : index
    %43 = vector.load %arg11[%c0_28, %c0_29] : memref<1x16xf32, #tpu.memory_space<vmem>>, vector<1x16xf32>
    %44 = vector.broadcast %43 : vector<1x16xf32> to vector<64x16xf32>
    %45 = arith.addf %42, %44 : vector<64x16xf32>
    %cst_30 = arith.constant 0.000000e+00 : f32
    %46 = vector.broadcast %cst_30 : f32 to vector<64x16xf32>
    %47 = arith.cmpf ogt, %45, %46 : vector<64x16xf32>
    %cst_31 = arith.constant 0.00999999977 : f32
    %48 = vector.broadcast %cst_31 : f32 to vector<64x16xf32>
    %49 = arith.mulf %48, %45 : vector<64x16xf32>
    %50 = arith.select %47, %45, %49 : vector<64x16xi1>, vector<64x16xf32>
    %c0_32 = arith.constant 0 : index
    %c0_33 = arith.constant 0 : index
    %51 = vector.load %arg12[%c0_32, %c0_33] : memref<16x1xf32, #tpu.memory_space<vmem>>, vector<16x1xf32>
    %cst_34 = arith.constant dense<0.000000e+00> : vector<64x1xf32>
    %52 = tpu.matmul %50, %51, %cst_34 {dimension_numbers = #tpu.dot_dimension_numbers<[1], [0], [0], [1], [0, 0, 1, 1], [], []>} : vector<64x16xf32>, vector<16x1xf32>, vector<64x1xf32> -> vector<64x1xf32>
    %53 = vector.shape_cast %52 : vector<64x1xf32> to vector<8x8xf32>
    %cst_35 = arith.constant dense<0xFF800000> : vector<8xf32>
    %54 = vector.multi_reduction <maximumf>, %53, %cst_35 [1] : vector<8x8xf32> to vector<8xf32>
    %55 = vector.shape_cast %54 : vector<8xf32> to vector<8x1xf32>
    %56 = vector.broadcast %55 : vector<8x1xf32> to vector<8x8xf32>
    %57 = arith.subf %53, %56 : vector<8x8xf32>
    %58 = math.exp %57 : vector<8x8xf32>
    %cst_36 = arith.constant dense<0.000000e+00> : vector<8xf32>
    %59 = vector.multi_reduction <add>, %58, %cst_36 [1] : vector<8x8xf32> to vector<8xf32>
    %60 = vector.shape_cast %59 : vector<8xf32> to vector<8x1xf32>
    %61 = tpu.reciprocal %60 : vector<8x1xf32> -> vector<8x1xf32>
    %62 = vector.broadcast %61 : vector<8x1xf32> to vector<8x8xf32>
    %63 = arith.mulf %58, %62 : vector<8x8xf32>
    %c0_37 = arith.constant 0 : index
    %c0_38 = arith.constant 0 : index
    %c0_39 = arith.constant 0 : index
    %64 = vector.load %arg13[%c0_37, %c0_38, %c0_39] : memref<1x8x8xf32, #tpu.memory_space<vmem>>, vector<1x8x8xf32>
    %65 = vector.shape_cast %64 : vector<1x8x8xf32> to vector<8x8xf32>
    %66 = vector.shape_cast %63 : vector<8x8xf32> to vector<1x8x8xf32>
    tpu.vector_store %arg13[%c0_37, %c0_38, %c0_39], %66 {strides = array<i32>} : memref<1x8x8xf32, #tpu.memory_space<vmem>>, vector<1x8x8xf32>,
    return
  }
  func.func @transform_0(%arg0: i32, %arg1: i32) -> (i32, i32, i32) {
    %c0_i32 = arith.constant 0 : i32
    %c0_i32_0 = arith.constant 0 : i32
    return %arg0, %arg1, %c0_i32 : i32, i32, i32
  }
  func.func @transform_1(%arg0: i32, %arg1: i32) -> (i32, i32, i32) {
    %c0_i32 = arith.constant 0 : i32
    %c0_i32_0 = arith.constant 0 : i32
    %c0_i32_1 = arith.constant 0 : i32
    return %arg0, %c0_i32, %c0_i32_0 : i32, i32, i32
  }
  func.func @transform_2(%arg0: i32, %arg1: i32) -> (i32, i32) {
    %c0_i32 = arith.constant 0 : i32
    %c0_i32_0 = arith.constant 0 : i32
    %c0_i32_1 = arith.constant 0 : i32
    return %c0_i32, %c0_i32_0 : i32, i32
  }
  func.func @transform_3(%arg0: i32, %arg1: i32) -> (i32, i32) {
    %c0_i32 = arith.constant 0 : i32
    %c0_i32_0 = arith.constant 0 : i32
    %c0_i32_1 = arith.constant 0 : i32
    return %c0_i32, %c0_i32_0 : i32, i32
  }
  func.func @transform_4(%arg0: i32, %arg1: i32) -> (i32, i32) {
    %c0_i32 = arith.constant 0 : i32
    %c0_i32_0 = arith.constant 0 : i32
    %c0_i32_1 = arith.constant 0 : i32
    return %c0_i32, %c0_i32_0 : i32, i32
  }
  func.func @transform_5(%arg0: i32, %arg1: i32) -> (i32, i32) {
    %c0_i32 = arith.constant 0 : i32
    %c0_i32_0 = arith.constant 0 : i32
    %c0_i32_1 = arith.constant 0 : i32
    return %c0_i32, %c0_i32_0 : i32, i32
  }
  func.func @transform_6(%arg0: i32, %arg1: i32) -> (i32, i32) {
    %c0_i32 = arith.constant 0 : i32
    %c0_i32_0 = arith.constant 0 : i32
    %c0_i32_1 = arith.constant 0 : i32
    return %c0_i32, %c0_i32_0 : i32, i32
  }
  func.func @transform_7(%arg0: i32, %arg1: i32) -> (i32, i32) {
    %c0_i32 = arith.constant 0 : i32
    %c0_i32_0 = arith.constant 0 : i32
    %c0_i32_1 = arith.constant 0 : i32
    return %c0_i32, %c0_i32_0 : i32, i32
  }
  func.func @transform_8(%arg0: i32, %arg1: i32) -> (i32, i32) {
    %c0_i32 = arith.constant 0 : i32
    %c0_i32_0 = arith.constant 0 : i32
    %c0_i32_1 = arith.constant 0 : i32
    return %c0_i32, %c0_i32_0 : i32, i32
  }
  func.func @transform_9(%arg0: i32, %arg1: i32) -> (i32, i32) {
    %c0_i32 = arith.constant 0 : i32
    %c0_i32_0 = arith.constant 0 : i32
    %c0_i32_1 = arith.constant 0 : i32
    return %c0_i32, %c0_i32_0 : i32, i32
  }
  func.func @transform_10(%arg0: i32, %arg1: i32) -> (i32, i32) {
    %c0_i32 = arith.constant 0 : i32
    %c0_i32_0 = arith.constant 0 : i32
    %c0_i32_1 = arith.constant 0 : i32
    return %c0_i32, %c0_i32_0 : i32, i32
  }
  func.func @transform_11(%arg0: i32, %arg1: i32) -> (i32, i32, i32) {
    %c0_i32 = arith.constant 0 : i32
    %c0_i32_0 = arith.constant 0 : i32
    return %arg0, %arg1, %c0_i32 : i32, i32, i32
  }
}

</mosaic_0001>

<bundles_post_ra>
// kernel: tpu_custom_call.1
= control target key start
LH: loop header
LB: loop body
LE: loop exit
PB: predicated region body
PF: predicated region fallthrough
CT: control target
= control target key end

     0   :  { %s2515_s0 = inlined_call_operand.vmem [shape: f32[2,8,4], index: 0, kind: input, shape index: {}]   ;;  %s2516_s1 = inlined_call_operand.vmem [shape: f32[2,8,4], index: 1, kind: input, shape index: {}]   ;;  %s2517_s2 = inlined_call_operand.vmem [shape: f32[4,32], index: 2, kind: input, shape index: {}]   ;;  %s2518_s3 = inlined_call_operand.vmem [shape: f32[1,32], index: 3, kind: input, shape index: {}]   ;;  %s2519_s4 = inlined_call_operand.vmem [shape: f32[32,32], index: 4, kind: input, shape index: {}]   ;;  %s2520_s5 = inlined_call_operand.vmem [shape: f32[1,32], index: 5, kind: input, shape index: {}]   ;;  %s2521_s6 = inlined_call_operand.vmem [shape: f32[32,16], index: 6, kind: input, shape index: {}]   ;;  %s2522_s7 = inlined_call_operand.vmem [shape: f32[1,16], index: 7, kind: input, shape index: {}]   ;;  %s2523_s8 = inlined_call_operand.vmem [shape: f32[16,16], index: 8, kind: input, shape index: {}]   ;;  %s2524_s9 = inlined_call_operand.vmem [shape: f32[1,16], index: 9, kind: input, shape index: {}]   ;;  %s2525_s10 = inlined_call_operand.vmem [shape: f32[16,1], index: 10, kind: input, shape index: {}]   ;;  %s2526_s11 = inlined_call_operand.hbm [shape: f32[2,8,8], index: 11, kind: output, shape index: {}]  }
   0x1   :  { %2527 = sst [smem:[#allocation5_spill]] %s2515_s0 }
   0x2   :  { %2528 = sst [smem:[#allocation6_spill]] %s2516_s1 }
   0x3   :  { %16 = vsyncpa [#allocation3], 0 }
   0x4   :  { %18 = vsyncpa [#allocation3 + $0x1], 0  ;;  %s2184_s17 = smov 0   ;;  %s2186_s18 = smov 0  }
   0x5   :  { %s2188_s19 = smov 0   ;;  %s2190_s20 = smov 0  }
   0x6   :  { %s2192_s21 = smov 0   ;;  %s2194_s22 = smov 0  }
   0x7 LB: > { %s1767_s23 = sadd.s32 4294967295, %s2119_s22   ;;  %s1768_s24 = sadd.s32 4294967294, %s2119_s22   ;;  %s2119_s22 = sphi %s2194_s22, %s24_s22   ;;  %s2115_s21 = sphi %s2192_s21, %s2537_s21   ;;  %s2111_s20 = sphi %s2190_s20, %s2536_s20   ;;  %s2107_s19 = sphi %s2188_s19, %s2535_s19   ;;  %s2103_s18 = sphi %s2186_s18, %s2534_s18   ;;  %s2099_s17 = sphi %s2184_s17, %s2533_s17  }
   0x8   : > { %s36_s25 = sadd.s32 1, %s2115_s21  ;;  %s288_s26 = sadd.s32 1, %s2107_s19 }
   0x9   : > { %p38_p0 = scmp.ge.s32.totalorder %s36_s25, 2  ;;  %p298_p1 = scmp.ne.s32.totalorder %s2107_s19, %s2103_s18 }
   0xa   : > { %p299_p2 = scmp.eq.s32.totalorder %s1767_s23, 1  ;;  %p304_p3 = scmp.ne.s32.totalorder %s2103_s18, %s2099_s17 }
   0xb   : > { %s2539_s25 = smov (%p38_p0, %s36_s25), 0  ;;  %p305_p5 = scmp.eq.s32.totalorder %s1768_s24, 1 }
   0xc   : > { %p2224_p4 = por %p299_p2, %p298_p1  ;;  %s283_s28 = ssub.s32 %s2115_s21, %s2539_s25 }
   0xd   : > { %p1771_p6 = scmp.ge.s32.totalorder %s2119_s22, 1  ;;  %p286_p7 = scmp.eq.s32.totalorder %s283_s28, 0 }
   0xe   : > { %p2231_p8 = por %p305_p5, %p304_p3  ;;  %p367_p9 = scmp.lt.s32.totalorder %s2119_s22, 3 }
   0xf   : > { %s2237_s30 = scalar_select %p286_p7, %s2107_s19, %s288_s26  }
  0x10   : > { %p368_p10 = pnand %p1771_p6, %p367_p9 }
  0x11   : > { %p413_p11 = scmp.lt.s32.totalorder (!%p368_p10), %s2111_s20, 1  ;;  %s2531_s0 = sld [smem:[#allocation5_spill]] (!%p368_p10) }
  0x12   : > { %371 = sbr.rel (%p368_p10) target bundleno = 1817 (0x719), region = 64  ;;  %s2532_s1 = sld [smem:[#allocation6_spill]] (!%p368_p10) }
  0x13   : > { %s1821_s28 = sshll.u32 (!%p368_p10), %s2111_s20, 7 }
  0x14   : > { %s2473_s16 = scalar_lea.hbm (!%p368_p10), %s2526_s11, %s1821_s28 }
  0x17   : > { %v532_v0 = vld [vmem:[%s2517_s2] sm:$0xf]  ;;  %vm565_vm0 = vcmask 1043456   ;;  %v431_v1 = vlaneseq  ;;  %v2121_v2 = vmov 1966171168   ;;  %s414_s14 = scalar_select %p413_p11, %s2111_s20, 1 }
  0x18   : > { %1877 = vmatprep.subr.msk.mxu0 %vm565_vm0, %v532_v0  ;;  %v429_v3 = vunpack.c.l.s4 %v2121_v2  ;;  %1963 = vmatprep.subr.msk.mxu1 %vm565_vm0, %v532_v0  ;;  %vm540_vm1 = vcmask 31744   ;;  %v701_v47 = vld [vmem:[%s2519_s4 + $0x18] sm:$0xff]  ;;  %v700_v48 = vld [vmem:[%s2519_s4 + $0x10] sm:$0xff]  ;;  %v699_v49 = vld [vmem:[%s2519_s4 + $0x8] sm:$0xff]  ;;  %vm709_vm2 = vcmask 261120  }
  0x19   : > { %1878 = vmatpush3.msk.msra.mxu0 %vm565_vm0, %v532_v0  ;;  %v2245_v4 = vshrl.u32 %v431_v1, 7  ;;  %1964 = vmatpush3.msk.msra.mxu1 %vm565_vm0, %v532_v0  ;;  %s1773_s15 = sshll.u32 %s414_s14, 3  ;;  %v698_v50 = vld [vmem:[%s2519_s4] sm:$0xff] }
  0x1a   : > { %v430_v5 = vunpack.c.0.s8 %v429_v3  ;;  %s419_s24 = scalar_lea.vmem %s2531_s0, %s1773_s15  ;;  %s423_s12 = scalar_lea.vmem %s2532_s1, %s1773_s15  ;;  %1891 = vmatprep.subr.mxu1 %v701_v47  ;;  %v1775_v51 = vld [vmem:[%s2518_s3] ss:$0 sm:$0xff] }
  0x1b   : > { %v424_v7 = vld [vmem:[%s419_s24] sm:$0xff]  ;;  %v2255_v9 = vsub.s32 0, %v2245_v4  ;;  %s410_s24 = sand.u32 1, %s2103_s18  }
  0x1c   : > { %v433_v6 = vsub.s32 %v430_v5, %v2245_v4  ;;  %v427_v10 = vcombine.high %v424_v7, %v424_v7  ;;  %v425_v14 = vld [vmem:[%s423_s12] sm:$0xff]  ;;  %s1772_s26 = sshll.u32 %s410_s24, 3  ;;  %s1670_s20 = scalar_lea.sflag [#allocation3], %s410_s24 }
  0x1d   : > { %s412_s12 = scalar_lea.vmem [#allocation2], %s1772_s26  ;;  %s2123_s26 = smov [#allocation2]  }
  0x1e   : > { %v434_v8 = vrot.slane %v424_v7, %v433_v6  ;;  %v441_v13 = vrot.slane %v427_v10, %v433_v6  ;;  %s1684_s13 = sshll.u32 %s412_s12, 4  ;;  %s2047_s0 = sshll.u32 %s2123_s26, 4  ;;  %s1685_s13 = int_to_ptr.vmem [resolvable:$true] %s1684_s13  ;;  %s2048_s0 = int_to_ptr.vmem [resolvable:$false] %s2047_s0 }
  0x1f   : > { %s2043_s23 = scalar_lea.vmem %s1685_s13, 128  ;;  %s2049_s1 = scalar_lea.vmem %s2048_s0, 256 }
  0x20   : > { %v442_v11 = vcombine.high %v434_v8, %v434_v8  ;;  %v450_v12 = vrot.slane %v434_v8, %v433_v6  ;;  %v443_v18 = vcombine.high %v441_v13, %v441_v13  ;;  %v457_v19 = vrot.slane %v441_v13, %v433_v6  ;;  %p2044_p12 = scmp.ne.s32.totalorder %s1685_s13, %s2043_s23  ;;  %p2050_p1 = scmp.lt.s32.totalorder %s1685_s13, %s2048_s0 }
  0x21   : > { %p2051_p2 = scmp.lt.s32.totalorder %s2049_s1, %s2043_s23 }
  0x22   : > { %v472_v15 = vcombine.high %v450_v12, %v450_v12  ;;  %v479_v16 = vrot.slane %v450_v12, %v2255_v9  ;;  %v464_v17 = vrot.slane %v442_v11, %v433_v6  ;;  %v473_v24 = vcombine.high %v457_v19, %v457_v19  ;;  %p2045_p13 = pnand %p2044_p12, %p2224_p4 }
  0x23   : > { %v495_v25 = vrot.slane %v457_v19, %v2255_v9  ;;  %v471_v26 = vrot.slane %v443_v18, %v433_v6  ;;  %p2052_p3 = por %p2051_p2, %p2050_p1 }
  0x24   : > { %v516_v20 = vsub.f32 %v479_v16, %v425_v14  ;;  %v483_v21 = vrot.slane %v464_v17, %v2255_v9  ;;  %v487_v22 = vrot.slane %v472_v15, %v2255_v9  ;;  %v474_v23 = vcombine.high %v464_v17, %v464_v17  ;;  %p2046_p0 = pneg %p2045_p13 }
  0x25   : > { %v520_v31 = vsub.f32 %v495_v25, %v425_v14  ;;  %v499_v32 = vrot.slane %v471_v26, %v2255_v9  ;;  %v503_v33 = vrot.slane %v473_v24, %v2255_v9  ;;  %v475_v34 = vcombine.high %v471_v26, %v471_v26  ;;  %v865_v24 = vld [vmem:[%s2521_s6 + $0x10] sm:$0xff]  ;;  %v864_v25 = vld [vmem:[%s2521_s6 + $0x8] sm:$0xff]  ;;  %v863_v26 = vld [vmem:[%s2521_s6] sm:$0xff] }
  0x26   : > { %v524_v27 = vand.u32 2147483647, %v516_v20  ;;  %v517_v28 = vsub.f32 %v483_v21, %v425_v14  ;;  %v518_v29 = vsub.f32 %v487_v22, %v425_v14  ;;  %v491_v30 = vrot.slane %v474_v23, %v2255_v9  ;;  %v866_v23 = vld [vmem:[%s2521_s6 + $0x18] sm:$0xff]  ;;  %p2053_p5 = pnand %p2052_p3, %p2046_p0 }
  0x27   : > { %v528_v38 = vand.u32 2147483647, %v520_v31  ;;  %v521_v39 = vsub.f32 %v499_v32, %v425_v14  ;;  %v522_v40 = vsub.f32 %v503_v33, %v425_v14  ;;  %v507_v41 = vrot.slane %v475_v34, %v2255_v9  ;;  %1911 = vmatprep.subr.mxu0 %v866_v23 }
  0x28   : > { %1879 = vmatprep.mubr.msk.f32.mxu0 %vm540_vm1, %v524_v27  ;;  %v525_v35 = vand.u32 2147483647, %v517_v28  ;;  %v526_v36 = vand.u32 2147483647, %v518_v29  ;;  %v519_v37 = vsub.f32 %v491_v30, %v425_v14  ;;  %v1028_v27 = vld [vmem:[%s2523_s8 + $0x8] sm:$0xff] }
  0x29   : > { %1885 = vmatprep.mubr.msk.f32.mxu1 %vm540_vm1, %v528_v38  ;;  %v529_v43 = vand.u32 2147483647, %v521_v39  ;;  %v530_v44 = vand.u32 2147483647, %v522_v40  ;;  %v523_v45 = vsub.f32 %v507_v41, %v425_v14  ;;  %v1785_v28 = vld [vmem:[%s2520_s5] ss:$0 sm:$0xff] }
  0x2a   : > { %1880 = vmatmul.mubr.msk.f32.vlgmr.msra.gmra.mxu0 %vm540_vm1, %v525_v35  ;;  %v527_v42 = vand.u32 2147483647, %v519_v37 }
  0x2b   : > { %1882 = vmatprep.mubr.msk.f32.mxu0 %vm540_vm1, %v526_v36  ;;  %1886 = vmatmul.mubr.msk.f32.vlgmr.msra.gmra.mxu1 %vm540_vm1, %v529_v43  ;;  %v531_v46 = vand.u32 2147483647, %v523_v45 }
  0x2c   : > { %1888 = vmatprep.mubr.msk.f32.mxu1 %vm540_vm1, %v530_v44  ;;  %1892 = vmatpush3.msra.mxu1 %v701_v47 }
  0x2d   : > { %1893 = vmatprep.subr.mxu1 %v700_v48  ;;  %1912 = vmatpush3.msra.mxu0 %v866_v23 }
  0x2e   : > { %1883 = vmatmul.mubr.msk.f32.gmra.mxu0 %vm540_vm1, %v527_v42  ;;  %1894 = vmatpush3.msra.mxu1 %v700_v48 }
  0x2f   : > { %1889 = vmatmul.mubr.msk.f32.gmra.mxu1 %vm540_vm1, %v531_v46  ;;  %1895 = vmatprep.subr.mxu1 %v699_v49 }
  0x30   : > { %1896 = vmatpush3.msra.mxu1 %v699_v49  ;;  %1913 = vmatprep.subr.mxu0 %v865_v24 }
  0x31   : > { %1897 = vmatprep.subr.mxu1 %v698_v50  ;;  %1914 = vmatpush3.msra.mxu0 %v865_v24 }
  0x32   : > { %1898 = vmatpush3.msra.mxu1 %v698_v50  ;;  %1915 = vmatprep.subr.mxu0 %v864_v25 }
  0x33   : > { %1916 = vmatpush3.msra.mxu0 %v864_v25  ;;  %1931 = vmatprep.subr.mxu1 %v1028_v27 }
  0x34   : > { %1917 = vmatprep.subr.mxu0 %v863_v26 }
  0x35   : > { %1918 = vmatpush3.msra.mxu0 %v863_v26 }
  0xea   : > { %v1881_v52 = vpop.f32.mrf.mxu0 }
  0xeb   : > { %v641_v53 = vadd.f32 %v1881_v52, %v1775_v51  ;;  %v1887_v56 = vpop.f32.mrf.mxu1 }
  0xec   : > { %v635_v54 = vpop.f32.mrf.mxu0  ;;  %v661_v0 = vadd.f32 %v1887_v56, %v1775_v51 }
  0xed   : > { %v636_v55 = vadd.f32 %v1775_v51, %v635_v54  ;;  %v683_v57 = vmul.f32 0.01, %v641_v53  ;;  %vm675_vm3 = vcmp.gt.f32.partialorder %v641_v53, 0.0  ;;  %v655_v61 = vpop.f32.mrf.mxu1 }
  0xee   : > { %v1884_v58 = vpop.f32.mrf.mxu0  ;;  %v656_v63 = vadd.f32 %v1775_v51, %v655_v61  ;;  %v687_v13 = vmul.f32 0.01, %v661_v0  ;;  %vm679_vm9 = vcmp.gt.f32.partialorder %v661_v0, 0.0  ;;  %v1027_v61 = vld [vmem:[%s2523_s8] sm:$0xff] }
  0xef   : > { %vm674_vm4 = vcmp.gt.f32.partialorder %v636_v55, 0.0  ;;  %v682_v59 = vmul.f32 0.01, %v636_v55  ;;  %v651_v60 = vadd.f32 %v1884_v58, %v1775_v51  ;;  %v1890_v5 = vpop.f32.mrf.mxu1  ;;  %v691_v6 = vsel %vm675_vm3, %v641_v53, %v683_v57 }
  0xf0   : > { %v645_v62 = vpop.f32.mrf.mxu0  ;;  %vm678_vm5 = vcmp.gt.f32.partialorder %v656_v63, 0.0  ;;  %v686_v8 = vmul.f32 0.01, %v656_v63  ;;  %v671_v16 = vadd.f32 %v1890_v5, %v1775_v51  ;;  %v695_v21 = vsel %vm679_vm9, %v661_v0, %v687_v13 }
  0xf1   : > { %v646_v2 = vadd.f32 %v1775_v51, %v645_v62  ;;  %v690_v3 = vsel %vm674_vm4, %v636_v55, %v682_v59  ;;  %v685_v7 = vmul.f32 0.01, %v651_v60  ;;  %vm677_vm6 = vcmp.gt.f32.partialorder %v651_v60, 0.0  ;;  %v665_v11 = vpop.f32.mrf.mxu1  ;;  %v1191_v62 = vld [vmem:[%s2525_s10 + $0x8] sm:$0xff] }
  0xf2   : > { %1899 = vmatprep.mubr.msk.f32.mxu1 %vm709_vm2, %v690_v3  ;;  %v666_v12 = vadd.f32 %v1775_v51, %v665_v11  ;;  %v694_v15 = vsel %vm678_vm5, %v656_v63, %v686_v8  ;;  %v689_v20 = vmul.f32 0.01, %v671_v16  ;;  %vm681_vm10 = vcmp.gt.f32.partialorder %v671_v16, 0.0  ;;  %1947 = vmatprep.subr.mxu0 %v1191_v62  ;;  %v1794_v63 = vld [vmem:[%s2522_s7] ss:$0 sm:$0xff] }
  0xf3   : > { %vm676_vm7 = vcmp.gt.f32.partialorder %v646_v2, 0.0  ;;  %v684_v10 = vmul.f32 0.01, %v646_v2  ;;  %1900 = vmatmul.mubr.msk.f32.vlgmr.msra.gmra.mxu1 %vm709_vm2, %v691_v6  ;;  %v693_v18 = vsel %vm677_vm6, %v651_v60, %v685_v7 }
  0xf4   : > { %vm680_vm8 = vcmp.gt.f32.partialorder %v666_v12, 0.0  ;;  %v688_v17 = vmul.f32 0.01, %v666_v12  ;;  %v697_v22 = vsel %vm681_vm10, %v671_v16, %v689_v20  ;;  %1932 = vmatpush3.msra.mxu1 %v1028_v27 }
  0xf5   : > { %v692_v14 = vsel %vm676_vm7, %v646_v2, %v684_v10  ;;  %1933 = vmatprep.subr.mxu1 %v1027_v61 }
  0xf6   : > { %1902 = vmatprep.mubr.msk.f32.mxu1 %vm709_vm2, %v692_v14  ;;  %v696_v19 = vsel %vm680_vm8, %v666_v12, %v688_v17  ;;  %1934 = vmatpush3.msra.mxu1 %v1027_v61 }
  0xf7   : > { %1903 = vmatmul.mubr.msk.f32.gmra.mxu1 %vm709_vm2, %v693_v18 }
  0xf8   : > { %1905 = vmatprep.mubr.msk.f32.mxu1 %vm709_vm2, %v694_v15 }
  0xfb   : > { %1906 = vmatmul.mubr.msk.f32.gmra.mxu1 %vm709_vm2, %v695_v21 }
  0xfc   : > { %1908 = vmatprep.mubr.msk.f32.mxu1 %vm709_vm2, %v696_v19 }
  0xff   : > { %1909 = vmatmul.mubr.msk.f32.gmra.mxu1 %vm709_vm2, %v697_v22 }
 0x1b3   : > { %v1901_v29 = vpop.f32.mrf.mxu1 }
 0x1b4   : > { %v806_v30 = vadd.f32 %v1901_v29, %v1785_v28 }
 0x1b5   : > { %v800_v31 = vpop.f32.mrf.mxu1 }
 0x1b6   : > { %v801_v32 = vadd.f32 %v1785_v28, %v800_v31  ;;  %v848_v33 = vmul.f32 0.01, %v806_v30  ;;  %vm840_vm11 = vcmp.gt.f32.partialorder %v806_v30, 0.0 }
 0x1b7   : > { %v1904_v34 = vpop.f32.mrf.mxu1 }
 0x1b8   : > { %vm839_vm12 = vcmp.gt.f32.partialorder %v801_v32, 0.0  ;;  %v847_v35 = vmul.f32 0.01, %v801_v32  ;;  %v816_v36 = vadd.f32 %v1904_v34, %v1785_v28  ;;  %v856_v40 = vsel %vm840_vm11, %v806_v30, %v848_v33 }
 0x1b9   : > { %v810_v37 = vpop.f32.mrf.mxu1 }
 0x1ba   : > { %v811_v38 = vadd.f32 %v1785_v28, %v810_v37  ;;  %v855_v39 = vsel %vm839_vm12, %v801_v32, %v847_v35  ;;  %v850_v41 = vmul.f32 0.01, %v816_v36  ;;  %vm842_vm13 = vcmp.gt.f32.partialorder %v816_v36, 0.0  ;;  %v1190_v35 = vld [vmem:[%s2525_s10] sm:$0xff] }
 0x1bb   : > { %v1907_v42 = vpop.f32.mrf.mxu1  ;;  %1919 = vmatprep.mubr.msk.f32.mxu0 %vm709_vm2, %v855_v39  ;;  %v1803_v37 = vld [vmem:[%s2524_s9] ss:$0 sm:$0xff] }
 0x1bc   : > { %vm841_vm14 = vcmp.gt.f32.partialorder %v811_v38, 0.0  ;;  %v849_v43 = vmul.f32 0.01, %v811_v38  ;;  %v826_v44 = vadd.f32 %v1907_v42, %v1785_v28  ;;  %1920 = vmatmul.mubr.msk.f32.vlgmr.msra.gmra.mxu0 %vm709_vm2, %v856_v40  ;;  %v858_v50 = vsel %vm842_vm13, %v816_v36, %v850_v41 }
 0x1bd   : > { %v820_v45 = vpop.f32.mrf.mxu1  ;;  %1948 = vmatpush3.msra.mxu0 %v1191_v62  ;;  %v2122_v36 = vmov 0  }
 0x1be   : > { %v821_v46 = vadd.f32 %v1785_v28, %v820_v45  ;;  %v857_v47 = vsel %vm841_vm14, %v811_v38, %v849_v43  ;;  %v852_v48 = vmul.f32 0.01, %v826_v44  ;;  %vm844_vm15 = vcmp.gt.f32.partialorder %v826_v44, 0.0  ;;  %1949 = vmatprep.subr.mxu0 %v1190_v35  ;;  %2022 = vset.pattern.permute.xlu0 %v2122_v36 }
 0x1bf   : > { %v1910_v49 = vpop.f32.mrf.mxu1  ;;  %1922 = vmatprep.mubr.msk.f32.mxu0 %vm709_vm2, %v857_v47  ;;  %1950 = vmatpush3.msra.mxu0 %v1190_v35 }
 0x1c0   : > { %vm843_vm0 = vcmp.gt.f32.partialorder %v821_v46, 0.0  ;;  %v851_v51 = vmul.f32 0.01, %v821_v46  ;;  %v836_v52 = vadd.f32 %v1910_v49, %v1785_v28  ;;  %1923 = vmatmul.mubr.msk.f32.gmra.mxu0 %vm709_vm2, %v858_v50  ;;  %v860_v57 = vsel %vm844_vm15, %v826_v44, %v852_v48  ;;  %2023 = vset.pattern.permute.xlu1 %v2122_v36 }
 0x1c1   : > { %v830_v53 = vpop.f32.mrf.mxu1 }
 0x1c2   : > { %v831_v54 = vadd.f32 %v1785_v28, %v830_v53  ;;  %v859_v55 = vsel %vm843_vm0, %v821_v46, %v851_v51  ;;  %v854_v56 = vmul.f32 0.01, %v836_v52  ;;  %vm846_vm1 = vcmp.gt.f32.partialorder %v836_v52, 0.0 }
 0x1c3   : > { %1925 = vmatprep.mubr.msk.f32.mxu0 %vm709_vm2, %v859_v55 }
 0x1c4   : > { %vm845_vm3 = vcmp.gt.f32.partialorder %v831_v54, 0.0  ;;  %v853_v58 = vmul.f32 0.01, %v831_v54  ;;  %1926 = vmatmul.mubr.msk.f32.gmra.mxu0 %vm709_vm2, %v860_v57  ;;  %v862_v60 = vsel %vm846_vm1, %v836_v52, %v854_v56 }
 0x1c6   : > { %v861_v59 = vsel %vm845_vm3, %v831_v54, %v853_v58 }
 0x1c7   : > { %1928 = vmatprep.mubr.msk.f32.mxu0 %vm709_vm2, %v861_v59 }
 0x1c8   : > { %1929 = vmatmul.mubr.msk.f32.gmra.mxu0 %vm709_vm2, %v862_v60  ;;  %vm1036_vm2 = vcmask 130048  }
 0x27c   : > { %v1921_v0 = vpop.f32.mrf.mxu0 }
 0x27d   : > { %v970_v2 = vadd.f32 %v1921_v0, %v1794_v63 }
 0x27e   : > { %v964_v3 = vpop.f32.mrf.mxu0 }
 0x27f   : > { %v965_v5 = vadd.f32 %v1794_v63, %v964_v3  ;;  %v1012_v6 = vmul.f32 0.01, %v970_v2  ;;  %vm1004_vm4 = vcmp.gt.f32.partialorder %v970_v2, 0.0 }
 0x280   : > { %v1924_v7 = vpop.f32.mrf.mxu0 }
 0x281   : > { %vm1003_vm5 = vcmp.gt.f32.partialorder %v965_v5, 0.0  ;;  %v1011_v8 = vmul.f32 0.01, %v965_v5  ;;  %v980_v10 = vadd.f32 %v1924_v7, %v1794_v63  ;;  %v1020_v14 = vsel %vm1004_vm4, %v970_v2, %v1012_v6 }
 0x282   : > { %v974_v11 = vpop.f32.mrf.mxu0 }
 0x283   : > { %v975_v12 = vadd.f32 %v1794_v63, %v974_v11  ;;  %v1019_v13 = vsel %vm1003_vm5, %v965_v5, %v1011_v8  ;;  %v1014_v15 = vmul.f32 0.01, %v980_v10  ;;  %vm1006_vm6 = vcmp.gt.f32.partialorder %v980_v10, 0.0 }
 0x284   : > { %v1927_v16 = vpop.f32.mrf.mxu0  ;;  %1935 = vmatprep.mubr.msk.f32.mxu1 %vm1036_vm2, %v1019_v13  ;;  %vm1389_vm5 = vcmask 1042434  }
 0x285   : > { %vm1005_vm7 = vcmp.gt.f32.partialorder %v975_v12, 0.0  ;;  %v1013_v17 = vmul.f32 0.01, %v975_v12  ;;  %v990_v18 = vadd.f32 %v1927_v16, %v1794_v63  ;;  %1936 = vmatmul.mubr.msk.f32.vlgmr.msra.gmra.mxu1 %vm1036_vm2, %v1020_v14  ;;  %v1022_v24 = vsel %vm1006_vm6, %v980_v10, %v1014_v15 }
 0x286   : > { %v984_v19 = vpop.f32.mrf.mxu0  ;;  %vm1391_vm6 = vcmask 1043459  }
 0x287   : > { %v985_v20 = vadd.f32 %v1794_v63, %v984_v19  ;;  %v1021_v21 = vsel %vm1005_vm7, %v975_v12, %v1013_v17  ;;  %v1016_v22 = vmul.f32 0.01, %v990_v18  ;;  %vm1008_vm8 = vcmp.gt.f32.partialorder %v990_v18, 0.0 }
 0x288   : > { %v1930_v23 = vpop.f32.mrf.mxu0  ;;  %1938 = vmatprep.mubr.msk.f32.mxu1 %vm1036_vm2, %v1021_v21  ;;  %v1354_v17 = vand.u32 127, %v431_v1  ;;  %vm1393_vm7 = vcmask 1044484  }
 0x289   : > { %vm1007_vm9 = vcmp.gt.f32.partialorder %v985_v20, 0.0  ;;  %v1015_v25 = vmul.f32 0.01, %v985_v20  ;;  %v1000_v26 = vadd.f32 %v1930_v23, %v1794_v63  ;;  %1939 = vmatmul.mubr.msk.f32.gmra.mxu1 %vm1036_vm2, %v1022_v24  ;;  %v1024_v31 = vsel %vm1008_vm8, %v990_v18, %v1016_v22 }
 0x28a   : > { %v994_v27 = vpop.f32.mrf.mxu0  ;;  %v2376_v19 = vsub.s32 %v1354_v17, %v2245_v4  ;;  %vm1395_vm8 = vcmask 1045509  }
 0x28b   : > { %v995_v28 = vadd.f32 %v1794_v63, %v994_v27  ;;  %v1023_v29 = vsel %vm1007_vm9, %v985_v20, %v1015_v25  ;;  %v1018_v30 = vmul.f32 0.01, %v1000_v26  ;;  %vm1010_vm10 = vcmp.gt.f32.partialorder %v1000_v26, 0.0 }
 0x28c   : > { %1941 = vmatprep.mubr.msk.f32.mxu1 %vm1036_vm2, %v1023_v29  ;;  %vm1397_vm9 = vcmask 1046534  }
 0x28d   : > { %vm1009_vm11 = vcmp.gt.f32.partialorder %v995_v28, 0.0  ;;  %v1017_v32 = vmul.f32 0.01, %v995_v28  ;;  %1942 = vmatmul.mubr.msk.f32.gmra.mxu1 %vm1036_vm2, %v1024_v31  ;;  %v1026_v34 = vsel %vm1010_vm10, %v1000_v26, %v1018_v30  ;;  %vm1399_vm10 = vcmask 1047559  }
 0x28f   : > { %v1025_v33 = vsel %vm1009_vm11, %v995_v28, %v1017_v32  ;;  %vm1402_vm11 = vcmask 64512  }
 0x290   : > { %1944 = vmatprep.mubr.msk.f32.mxu1 %vm1036_vm2, %v1025_v33 }
 0x291   : > { %1945 = vmatmul.mubr.msk.f32.gmra.mxu1 %vm1036_vm2, %v1026_v34 }
 0x345   : > { %v1937_v38 = vpop.f32.mrf.mxu1 }
 0x346   : > { %v1133_v39 = vadd.f32 %v1937_v38, %v1803_v37 }
 0x347   : > { %v1127_v40 = vpop.f32.mrf.mxu1 }
 0x348   : > { %v1128_v41 = vadd.f32 %v1803_v37, %v1127_v40  ;;  %v1175_v42 = vmul.f32 0.01, %v1133_v39  ;;  %vm1167_vm12 = vcmp.gt.f32.partialorder %v1133_v39, 0.0 }
 0x349   : > { %v1940_v43 = vpop.f32.mrf.mxu1 }
 0x34a   : > { %vm1166_vm13 = vcmp.gt.f32.partialorder %v1128_v41, 0.0  ;;  %v1174_v44 = vmul.f32 0.01, %v1128_v41  ;;  %v1143_v45 = vadd.f32 %v1940_v43, %v1803_v37  ;;  %v1183_v49 = vsel %vm1167_vm12, %v1133_v39, %v1175_v42 }
 0x34b   : > { %v1137_v46 = vpop.f32.mrf.mxu1  ;;  %v1413_v42 = vsub.s32 1, %v2245_v4  ;;  %v1417_v43 = vsub.s32 2, %v2245_v4 }
 0x34c   : > { %v1138_v47 = vadd.f32 %v1803_v37, %v1137_v46  ;;  %v1182_v48 = vsel %vm1166_vm13, %v1128_v41, %v1174_v44  ;;  %v1177_v50 = vmul.f32 0.01, %v1143_v45  ;;  %vm1169_vm14 = vcmp.gt.f32.partialorder %v1143_v45, 0.0 }
 0x34d   : > { %v1943_v51 = vpop.f32.mrf.mxu1  ;;  %1951 = vmatprep.mubr.msk.f32.mxu0 %vm1036_vm2, %v1182_v48 }
 0x34e   : > { %vm1168_vm15 = vcmp.gt.f32.partialorder %v1138_v47, 0.0  ;;  %v1176_v52 = vmul.f32 0.01, %v1138_v47  ;;  %v1153_v53 = vadd.f32 %v1943_v51, %v1803_v37  ;;  %1952 = vmatmul.mubr.msk.f32.vlgmr.msra.gmra.mxu0 %vm1036_vm2, %v1183_v49  ;;  %v1185_v59 = vsel %vm1169_vm14, %v1143_v45, %v1177_v50 }
 0x34f   : > { %v1147_v54 = vpop.f32.mrf.mxu1 }
 0x350   : > { %v1148_v55 = vadd.f32 %v1803_v37, %v1147_v54  ;;  %v1184_v56 = vsel %vm1168_vm15, %v1138_v47, %v1176_v52  ;;  %v1179_v57 = vmul.f32 0.01, %v1153_v53  ;;  %vm1171_vm0 = vcmp.gt.f32.partialorder %v1153_v53, 0.0 }
 0x351   : > { %v1946_v58 = vpop.f32.mrf.mxu1  ;;  %1954 = vmatprep.mubr.msk.f32.mxu0 %vm1036_vm2, %v1184_v56  ;;  %v1421_v47 = vsub.s32 3, %v2245_v4  ;;  %v1425_v52 = vsub.s32 4, %v2245_v4  ;;  %v1429_v56 = vsub.s32 5, %v2245_v4 }
 0x352   : > { %vm1170_vm1 = vcmp.gt.f32.partialorder %v1148_v55, 0.0  ;;  %v1178_v60 = vmul.f32 0.01, %v1148_v55  ;;  %v1163_v61 = vadd.f32 %v1946_v58, %v1803_v37  ;;  %1955 = vmatmul.mubr.msk.f32.gmra.mxu0 %vm1036_vm2, %v1185_v59  ;;  %v1187_v3 = vsel %vm1171_vm0, %v1153_v53, %v1179_v57 }
 0x353   : > { %v1157_v62 = vpop.f32.mrf.mxu1 }
 0x354   : > { %v1158_v63 = vadd.f32 %v1803_v37, %v1157_v62  ;;  %v1186_v0 = vsel %vm1170_vm1, %v1148_v55, %v1178_v60  ;;  %v1181_v2 = vmul.f32 0.01, %v1163_v61  ;;  %vm1173_vm3 = vcmp.gt.f32.partialorder %v1163_v61, 0.0 }
 0x355   : > { %1957 = vmatprep.mubr.msk.f32.mxu0 %vm1036_vm2, %v1186_v0  ;;  %v1433_v60 = vsub.s32 6, %v2245_v4  ;;  %v1437_v0 = vsub.s32 7, %v2245_v4 }
 0x356   : > { %vm1172_vm4 = vcmp.gt.f32.partialorder %v1158_v63, 0.0  ;;  %v1180_v5 = vmul.f32 0.01, %v1158_v63  ;;  %1958 = vmatmul.mubr.msk.f32.gmra.mxu0 %vm1036_vm2, %v1187_v3  ;;  %v1189_v7 = vsel %vm1173_vm3, %v1163_v61, %v1181_v2 }
 0x358   : > { %v1188_v6 = vsel %vm1172_vm4, %v1158_v63, %v1180_v5 }
 0x359   : > { %1960 = vmatprep.mubr.msk.f32.mxu0 %vm1036_vm2, %v1188_v6 }
 0x35a   : > { %1961 = vmatmul.mubr.msk.f32.gmra.mxu0 %vm1036_vm2, %v1189_v7  ;;  %vm1387_vm2 = vcmask 1041409  }
 0x40e   : > { %v2353_v8 = vpop.f32.mrf.mxu0 }
 0x40f   : > { %1333 = vperm.xlu0 %2022, %v2353_v8  }
 0x410   : > { %v1282_v10 = vpop.f32.mrf.mxu0 }
 0x412   : > { %v2356_v11 = vpop.f32.mrf.mxu0 }
 0x413   : > { %1330 = vperm.xlu0 %2022, %v1282_v10   ;;  %1339 = vperm.xlu1 %2023, %v2356_v11  }
 0x414   : > { %v2359_v12 = vpop.f32.mrf.mxu0 }
 0x416   : > { %v2361_v13 = vpop.f32.mrf.mxu0 }
 0x417   : > { %1336 = vperm.xlu1 %2023, %v2359_v12  }
 0x418   : > { %v2364_v14 = vpop.f32.mrf.mxu0 }
 0x419   : > { %1342 = vperm.xlu0 %2022, %v2364_v14  }
 0x41a   : > { %v2367_v15 = vpop.f32.mrf.mxu0 }
 0x41b   : > { %1345 = vperm.xlu1 %2023, %v2361_v13  }
 0x41c   : > { %v2370_v16 = vpop.f32.mrf.mxu0 }
 0x41d   : > { %1348 = vperm.xlu0 %2022, %v2370_v16  }
 0x41f   : > { %1351 = vperm.xlu1 %2023, %v2367_v15  }
 0x48a   : > { %v1334_v18 = vpop.permute.xlu0 %1333 }
 0x48b   : > { %v1362_v23 = vrot.slane %v1334_v18, %v2376_v19 }
 0x48e   : > { %v1331_v20 = vpop.permute.xlu0 %1330  ;;  %v1340_v21 = vpop.permute.xlu1 %1339 }
 0x48f   : > { %v1358_v22 = vrot.slane %v1331_v20, %v2376_v19  ;;  %v1370_v1 = vrot.slane %v1340_v21, %v2376_v19 }
 0x491   : > { %v1388_v26 = vsel %vm1387_vm2, %v1362_v23, %v1358_v22 }
 0x492   : > { %v1337_v24 = vpop.permute.xlu1 %1336 }
 0x493   : > { %v1366_v25 = vrot.slane %v1337_v24, %v2376_v19 }
 0x494   : > { %v1343_v27 = vpop.permute.xlu0 %1342 }
 0x495   : > { %v1390_v28 = vsel %vm1389_vm5, %v1366_v25, %v1388_v26  ;;  %v1374_v29 = vrot.slane %v1343_v27, %v2376_v19 }
 0x496   : > { %v1392_v30 = vsel %vm1391_vm6, %v1370_v1, %v1390_v28  ;;  %v1346_v31 = vpop.permute.xlu1 %1345 }
 0x497   : > { %v1394_v32 = vsel %vm1393_vm7, %v1374_v29, %v1392_v30  ;;  %v1378_v33 = vrot.slane %v1346_v31, %v2376_v19 }
 0x498   : > { %v1349_v34 = vpop.permute.xlu0 %1348 }
 0x499   : > { %v1396_v35 = vsel %vm1395_vm8, %v1378_v33, %v1394_v32  ;;  %v1382_v36 = vrot.slane %v1349_v34, %v2376_v19 }
 0x49a   : > { %v1352_v37 = vpop.permute.xlu1 %1351 }
 0x49b   : > { %v1386_v38 = vrot.slane %v1352_v37, %v2376_v19  ;;  %v1398_v39 = vsel %vm1397_vm9, %v1382_v36, %v1396_v35 }
 0x49d   : > { %v1400_v40 = vsel %vm1399_vm10, %v1386_v38, %v1398_v39 }
 0x49e   : > { %v1403_v41 = vsel %vm1402_vm11, %v1400_v40, -inf }
 0x49f   : > { %1404 = vmax.xlane.f32.xlu0 %v1403_v41 }
 0x528   : > { %v1405_v44 = vpop.xlane.xlu0 %1404 }
 0x529   : > { %v1410_v45 = vrot.slane %v1405_v44, %v2255_v9  ;;  %v1414_v46 = vrot.slane %v1405_v44, %v1413_v42  ;;  %v1418_v48 = vrot.slane %v1405_v44, %v1417_v43  ;;  %v1422_v53 = vrot.slane %v1405_v44, %v1421_v47 }
 0x52a   : > { %v1426_v57 = vrot.slane %v1405_v44, %v1425_v52  ;;  %v1430_v61 = vrot.slane %v1405_v44, %v1429_v56  ;;  %v1434_v2 = vrot.slane %v1405_v44, %v1433_v60  ;;  %v1438_v7 = vrot.slane %v1405_v44, %v1437_v0 }
 0x52b   : > { %v1447_v49 = vsub.f32 %v1282_v10, %v1410_v45  ;;  %v1448_v50 = vsub.f32 %v2353_v8, %v1414_v46  ;;  %v1449_v54 = vsub.f32 %v2359_v12, %v1418_v48  ;;  %v1450_v58 = vsub.f32 %v2356_v11, %v1422_v53 }
 0x52c   : > { %v1451_v62 = vsub.f32 %v2364_v14, %v1426_v57  ;;  %v1452_v3 = vsub.f32 %v2361_v13, %v1430_v61  ;;  %v1453_v8 = vsub.f32 %v2370_v16, %v1434_v2  ;;  %v1454_v12 = vsub.f32 %v2367_v15, %v1438_v7 }
 0x52d   : > { %v1455_v51 = vmul.f32 1.442695, %v1447_v49  ;;  %v1457_v55 = vmul.f32 1.442695, %v1448_v50  ;;  %v1459_v59 = vmul.f32 1.442695, %v1449_v54 }
 0x52e   : > { %v1461_v63 = vmul.f32 1.442695, %v1450_v58  ;;  %v1463_v5 = vmul.f32 1.442695, %v1451_v62  ;;  %v1465_v10 = vmul.f32 1.442695, %v1452_v3 }
 0x52f   : > { %2025 = vpow2.f32 %v1455_v51  ;;  %v1467_v14 = vmul.f32 1.442695, %v1453_v8  ;;  %v1469_v13 = vmul.f32 1.442695, %v1454_v12 }
 0x530   : > { %2027 = vpow2.f32 %v1457_v55 }
 0x531   : > { %2029 = vpow2.f32 %v1459_v59 }
 0x532   : > { %2031 = vpow2.f32 %v1461_v63 }
 0x533   : > { %2033 = vpow2.f32 %v1463_v5 }
 0x534   : > { %2035 = vpow2.f32 %v1465_v10 }
 0x535   : > { %2037 = vpow2.f32 %v1467_v14 }
 0x536   : > { %2039 = vpow2.f32 %v1469_v13 }
 0x53c   : > { %v2026_v6 = vpop.eup %2025 }
 0x53d   : > { %1480 = vperm.xlu1 %2023, %v2026_v6   ;;  %v2028_v11 = vpop.eup %2027 }
 0x53e   : > { %v2030_v17 = vpop.eup %2029 }
 0x53f   : > { %v2032_v18 = vpop.eup %2031 }
 0x540   : > { %v2034_v20 = vpop.eup %2033 }
 0x541   : > { %1483 = vperm.xlu1 %2023, %v2028_v11   ;;  %v2036_v21 = vpop.eup %2035 }
 0x542   : > { %v2038_v16 = vpop.eup %2037 }
 0x543   : > { %v2040_v22 = vpop.eup %2039 }
 0x545   : > { %1486 = vperm.xlu1 %2023, %v2030_v17  }
 0x549   : > { %1489 = vperm.xlu1 %2023, %v2032_v18  }
 0x54d   : > { %1492 = vperm.xlu1 %2023, %v2034_v20  }
 0x551   : > { %1495 = vperm.xlu1 %2023, %v2036_v21  }
 0x555   : > { %1498 = vperm.xlu1 %2023, %v2038_v16  }
 0x559   : > { %1501 = vperm.xlu1 %2023, %v2040_v22  }
 0x5b8   : > { %v1481_v23 = vpop.permute.xlu1 %1480 }
 0x5b9   : > { %v1506_v29 = vrot.slane %v1481_v23, %v2376_v19 }
 0x5bc   : > { %v1484_v24 = vpop.permute.xlu1 %1483 }
 0x5bd   : > { %v1510_v27 = vrot.slane %v1484_v24, %v2376_v19 }
 0x5bf   : > { %v1535_v33 = vsel %vm1387_vm2, %v1510_v27, %v1506_v29 }
 0x5c0   : > { %v1487_v15 = vpop.permute.xlu1 %1486 }
 0x5c1   : > { %v1514_v28 = vrot.slane %v1487_v15, %v2376_v19 }
 0x5c3   : > { %v1536_v35 = vsel %vm1389_vm5, %v1514_v28, %v1535_v33 }
 0x5c4   : > { %v1490_v25 = vpop.permute.xlu1 %1489 }
 0x5c5   : > { %v1518_v30 = vrot.slane %v1490_v25, %v2376_v19 }
 0x5c7   : > { %v1537_v37 = vsel %vm1391_vm6, %v1518_v30, %v1536_v35 }
 0x5c8   : > { %v1493_v26 = vpop.permute.xlu1 %1492 }
 0x5c9   : > { %v1522_v31 = vrot.slane %v1493_v26, %v2376_v19 }
 0x5cb   : > { %v1538_v38 = vsel %vm1393_vm7, %v1522_v31, %v1537_v37 }
 0x5cc   : > { %v1496_v1 = vpop.permute.xlu1 %1495 }
 0x5cd   : > { %v1526_v34 = vrot.slane %v1496_v1, %v2376_v19 }
 0x5cf   : > { %v1539_v40 = vsel %vm1395_vm8, %v1526_v34, %v1538_v38 }
 0x5d0   : > { %v1499_v32 = vpop.permute.xlu1 %1498 }
 0x5d1   : > { %v1530_v36 = vrot.slane %v1499_v32, %v2376_v19 }
 0x5d3   : > { %v1540_v44 = vsel %vm1397_vm9, %v1530_v36, %v1539_v40 }
 0x5d4   : > { %v1502_v39 = vpop.permute.xlu1 %1501 }
 0x5d5   : > { %v1534_v41 = vrot.slane %v1502_v39, %v2376_v19 }
 0x5d7   : > { %v1541_v45 = vsel %vm1399_vm10, %v1534_v41, %v1540_v44 }
 0x5d8   : > { %v1543_v46 = vsel %vm1402_vm11, %v1541_v45, 0.0 }
 0x5d9   : > { %1544 = vadd.xlane.f32.xlu0 %v1543_v46 }
 0x662   : > { %v1545_v48 = vpop.xlane.xlu0 %1544 }
 0x663   : > { %2041 = vrcp.f32 %v1545_v48 }
 0x670   : > { %v2042_v49 = vpop.eup %2041 }
 0x671   : > { %v1555_v50 = vrot.slane %v2042_v49, %v1413_v42  ;;  %v1551_v51 = vrot.slane %v2042_v49, %v2255_v9  ;;  %v1559_v55 = vrot.slane %v2042_v49, %v1417_v43  ;;  %v1563_v58 = vrot.slane %v2042_v49, %v1421_v47 }
 0x672   : > { %v1567_v61 = vrot.slane %v2042_v49, %v1425_v52  ;;  %v1571_v9 = vrot.slane %v2042_v49, %v1429_v56  ;;  %v1575_v43 = vrot.slane %v2042_v49, %v1433_v60  ;;  %v1579_v47 = vrot.slane %v2042_v49, %v1437_v0 }
 0x673   : > { %v1589_v53 = vmul.f32 %v2028_v11, %v1555_v50  ;;  %v1588_v54 = vmul.f32 %v2026_v6, %v1551_v51  ;;  %v1590_v57 = vmul.f32 %v2030_v17, %v1559_v55  ;;  %v1591_v59 = vmul.f32 %v2032_v18, %v1563_v58 }
 0x674   : > { %v1592_v42 = vmul.f32 %v2034_v20, %v1567_v61  ;;  %v1593_v62 = vmul.f32 %v2036_v21, %v1571_v9  ;;  %v1594_v63 = vmul.f32 %v2038_v16, %v1575_v43  ;;  %v1595_v2 = vmul.f32 %v2040_v22, %v1579_v47 }
 0x675   : > { %1608 = vperm.xlu0 %2022, %v1589_v53   ;;  %1605 = vperm.xlu1 %2023, %v1588_v54  }
 0x679   : > { %1611 = vperm.xlu1 %2023, %v1590_v57  }
 0x67d   : > { %1614 = vperm.xlu1 %2023, %v1591_v59  }
 0x681   : > { %1617 = vperm.xlu1 %2023, %v1592_v42  }
 0x685   : > { %1620 = vperm.xlu1 %2023, %v1593_v62  }
 0x689   : > { %1623 = vperm.xlu1 %2023, %v1594_v63  }
 0x68d   : > { %1626 = vperm.xlu1 %2023, %v1595_v2  }
 0x6f0   : > { %v1606_v52 = vpop.permute.xlu1 %1605  ;;  %v1609_v7 = vpop.permute.xlu0 %1608 }
 0x6f1   : > { %v1635_v8 = vrot.slane %v1609_v7, %v2376_v19  ;;  %v1631_v60 = vrot.slane %v1606_v52, %v2376_v19 }
 0x6f3   : > { %v1660_v12 = vsel %vm1387_vm2, %v1635_v8, %v1631_v60 }
 0x6f4   : > { %v1612_v3 = vpop.permute.xlu1 %1611 }
 0x6f5   : > { %v1639_v10 = vrot.slane %v1612_v3, %v2376_v19 }
 0x6f7   : > { %v1661_v17 = vsel %vm1389_vm5, %v1639_v10, %v1660_v12 }
 0x6f8   : > { %v1615_v5 = vpop.permute.xlu1 %1614 }
 0x6f9   : > { %v1643_v4 = vrot.slane %v1615_v5, %v2376_v19 }
 0x6fb   : > { %v1662_v18 = vsel %vm1391_vm6, %v1643_v4, %v1661_v17 }
 0x6fc   : > { %v1618_v6 = vpop.permute.xlu1 %1617 }
 0x6fd   : > { %v1647_v0 = vrot.slane %v1618_v6, %v2376_v19 }
 0x6ff   : > { %v1663_v20 = vsel %vm1393_vm7, %v1647_v0, %v1662_v18 }
 0x700   : > { %v1621_v56 = vpop.permute.xlu1 %1620 }
 0x701   : > { %v1651_v14 = vrot.slane %v1621_v56, %v2376_v19 }
 0x703   : > { %v1664_v16 = vsel %vm1395_vm8, %v1651_v14, %v1663_v20 }
 0x704   : > { %v1624_v11 = vpop.permute.xlu1 %1623 }
 0x705   : > { %v1655_v13 = vrot.slane %v1624_v11, %v2376_v19 }
 0x707   : > { %v1665_v23 = vsel %vm1397_vm9, %v1655_v13, %v1664_v16 }
 0x708   : > { %v1627_v21 = vpop.permute.xlu1 %1626 }
 0x709   : > { %v1659_v22 = vrot.slane %v1627_v21, %v2376_v19 }
 0x70b   : > { %v1666_v24 = vsel %vm1399_vm10, %v1659_v22, %v1665_v23 }
 0x70c   : > { %1668 = vst.msk [vmem:[%s412_s12] sm:$0xff] %vm1402_vm11, %v1666_v24 }
 0x70d   : > { %2056 = shalt.err (!%p2053_p5)
}
 0x70e   : > { %s2057_s28 = scalar_lea.hbm %s2473_s16, 128  ;;  %s2061_s14 = scalar_lea.hbm %s2526_s11, 256 }
 0x70f   : > { %p2058_p6 = scmp.ne.s32.totalorder %s2473_s16, %s2057_s28  ;;  %p2062_p10 = scmp.lt.s32.totalorder %s2473_s16, %s2526_s11 }
 0x710   : > { %p2063_p11 = scmp.lt.s32.totalorder %s2061_s14, %s2057_s28 }
 0x711   : > { %p2059_p7 = pnand %p2058_p6, %p2224_p4 }
 0x712   : > { %p2064_p12 = por %p2063_p11, %p2062_p10 }
 0x713   : > { %p2060_p9 = pneg %p2059_p7 }
 0x715   : > { %p2065_p13 = pnand %p2064_p12, %p2060_p9 }
 0x717   : > { %2068 = shalt.err (!%p2065_p13)
}
 0x718   : > { %1965 = dma.vmem_to_hbm [thread:$0]  (%p2224_p4), %s1685_s13, 128, %s2473_s16, %s1670_s20  }
 0x719 PF: > { %p1971_p0 = scmp.ge.s32.totalorder %s2119_s22, 2  ;;  %s1696_s0 = sand.u32 1, %s2099_s17  }
 0x71a   : > { %s1697_s1 = scalar_lea.sflag [#allocation3], %s1696_s0 }
 0x71b   : > { %p1968_p1 = pnand %p1971_p0, %p2231_p8 }
 0x71d   : > { %p1969_p2 = pneg %p1968_p1 }
 0x71f   : > { %2094 = dma.done.wait (%p1969_p2), %s1697_s1, 128  }
 0x720   : > { %2096 = vsyncadd (%p1969_p2), %s1697_s1, 4294967168  ;;  %s24_s22 = sadd.s32 1, %s2119_s22   ;;  %s2533_s17 = smov %s2103_s18 }
 0x721   : > { %p21_p3 = scmp.ge.s32.totalorder %s24_s22, 4   ;;  %s2534_s18 = smov %s2107_s19 }
 0x722   : > { %s2535_s19 = smov %s2237_s30  ;;  %s2536_s20 = smov %s2115_s21 }
 0x723   : > { %s2537_s21 = smov %s2539_s25  ;;  %23 = sbr.rel (!%p21_p3) target bundleno = 7 (0x7), region = 102 }
 0x728   :  { %1702 = vsyncpa [#allocation3], 1 }
 0x729   :  { %1704 = vsyncpa [#allocation3 + $0x1], 1 }

</bundles_post_ra>
